<compile_context>
chip_gen: v7x
topology: tpu7x:2x2x1
jax: 0.10.0
libtpu: 0.0.40
codegen_flags: <defaults>
</compile_context>

<pallas_src>
import jax
import jax.numpy as jnp
from jax.experimental import pallas as pl
from jax.experimental.pallas import tpu as pltpu

LN_EPS = 1e-5  # PyTorch nn.LayerNorm default


def identity_block_kernel(xt_ref, w_ref, b_ref, g_ref, beta_ref, avg_ref, o_ref):
    # xt_ref:   (K, HW)    im2col patches (transposed) for one batch element
    # w_ref:    (Cout, K)  flattened conv weight
    # b_ref:    (Cout, 1)  conv bias (broadcast over lanes)
    # g_ref:    (1, HW)    LayerNorm gamma, tiled over H along the lane axis
    # beta_ref: (1, HW)    LayerNorm beta, tiled over H along the lane axis
    # avg_ref:  (HW, HW)   block-averaging matrix: 1/W within each W-segment, else 0
    # o_ref:    (Cout, HW) output (NCHW, flattened spatial)

    # Conv as a single MXU matmul: (Cout, K) x (K, HW) -> (Cout, HW)
    conv = jnp.dot(w_ref[...], xt_ref[...], preferred_element_type=jnp.float32)
    conv = conv + b_ref[...]                                       # (Cout, 1) broadcast

    # LayerNorm over each W-segment of the lane axis, reductions done on the MXU.
    mean = jnp.dot(conv, avg_ref[...], preferred_element_type=jnp.float32)
    centered = conv - mean
    var = jnp.dot(centered * centered, avg_ref[...],
                  preferred_element_type=jnp.float32)
    xhat = centered * jax.lax.rsqrt(var + LN_EPS)
    y = xhat * g_ref[...] + beta_ref[...]

    # ReLU
    o_ref[...] = jnp.maximum(y, 0.0).astype(o_ref.dtype)


def identity_block_forward(x, conv_w, conv_b, ln_gamma, ln_beta):
    """x: (B, C, H, W) NCHW float32. Returns (B, C, H, W) NCHW."""
    B, C, H, W = x.shape
    Cout = conv_w.shape[0]
    K = C * 9
    HW = H * W

    # ---- glue: zero-pad + im2col (plain JAX), laid out as (B, K, H*W) ----
    xp = jnp.pad(x, ((0, 0), (0, 0), (1, 1), (1, 1)))
    patches = [xp[:, :, dy:dy + H, dx:dx + W]                      # each (B, C, H, W)
               for dy in range(3) for dx in range(3)]
    xcol = jnp.stack(patches, axis=2)                              # (B, C, 9, H, W)
    xcolT = xcol.reshape(B, K, HW)                                 # (B, K, HW)
    wm = conv_w.reshape(Cout, K)                                   # (Cout, K)

    # Block-averaging matrix over each W-segment of the flattened HW axis.
    hw = jnp.arange(HW)
    avg = (hw[:, None] // W == hw[None, :] // W).astype(x.dtype) / W  # (HW, HW)

    # gamma/beta tiled so that index h*W + w picks gamma[w] / beta[w].
    g_t = jnp.tile(ln_gamma, H).reshape(1, HW)
    b_t = jnp.tile(ln_beta, H).reshape(1, HW)

    out = pl.pallas_call(
        identity_block_kernel,
        out_shape=jax.ShapeDtypeStruct((B, Cout, HW), x.dtype),
        grid_spec=pltpu.PrefetchScalarGridSpec(
            num_scalar_prefetch=0,
            grid=(B,),
            in_specs=[
                pl.BlockSpec((None, K, HW), lambda b: (b, 0, 0)),   # xcolT (per batch)
                pl.BlockSpec((Cout, K), lambda b: (0, 0)),          # weight
                pl.BlockSpec((Cout, 1), lambda b: (0, 0)),          # bias
                pl.BlockSpec((1, HW), lambda b: (0, 0)),            # gamma (tiled)
                pl.BlockSpec((1, HW), lambda b: (0, 0)),            # beta (tiled)
                pl.BlockSpec((HW, HW), lambda b: (0, 0)),           # averaging matrix
            ],
            out_specs=pl.BlockSpec((None, Cout, HW), lambda b: (b, 0, 0)),
        ),
        compiler_params=pltpu.CompilerParams(
            dimension_semantics=("parallel",)),
    )(xcolT, wm, conv_b.reshape(Cout, 1), g_t, b_t, avg)

    # (B, Cout, HW) -> (B, Cout, H, W): contiguous reshape, no transpose needed.
    return out.reshape(B, Cout, H, W)


def identity_block_reference(x, conv_w, conv_b, ln_gamma, ln_beta):
    """Pure-JAX reference mirroring the PyTorch module."""
    conv = jax.lax.conv_general_dilated(
        x, conv_w, window_strides=(1, 1), padding=((1, 1), (1, 1)),
        dimension_numbers=('NCHW', 'OIHW', 'NCHW'))
    conv = conv + conv_b[None, :, None, None]
    mean = conv.mean(-1, keepdims=True)
    var = ((conv - mean) ** 2).mean(-1, keepdims=True)
    y = (conv - mean) / jnp.sqrt(var + LN_EPS) * ln_gamma + ln_beta
    return jnp.maximum(y, 0.0)


if __name__ == "__main__":
    # identity_block(t_size=4, n_step=16); input (B, t_size, H, n_step)
    B, C, H, W = 2, 4, 16, 16

    key = jax.random.PRNGKey(0)
    k1, k2, k3, k4, k5 = jax.random.split(key, 5)
    x = jax.random.normal(k1, (B, C, H, W), jnp.float32)
    conv_w = 0.1 * jax.random.normal(k2, (C, C, 3, 3), jnp.float32)
    conv_b = 0.1 * jax.random.normal(k3, (C,), jnp.float32)
    ln_gamma = 1.0 + 0.1 * jax.random.normal(k4, (W,), jnp.float32)
    ln_beta = 0.1 * jax.random.normal(k5, (W,), jnp.float32)

    out = identity_block_forward(x, conv_w, conv_b, ln_gamma, ln_beta)
    out = jax.block_until_ready(out)

    ref = identity_block_reference(x, conv_w, conv_b, ln_gamma, ln_beta)
    assert out.shape == (B, C, H, W), out.shape
    assert jnp.allclose(out, ref, atol=1e-4, rtol=1e-4), \
        float(jnp.max(jnp.abs(out - ref)))

    print("KERNEL_OK")
</pallas_src>

<mosaic_0001>
module attributes {stable_mosaic.version = 11 : i64} {
  func.func @identity_block_kernel(%arg0: i32, %arg1: memref<1x36x256xf32, #tpu.memory_space<vmem>>, %arg2: memref<4x36xf32, #tpu.memory_space<vmem>>, %arg3: memref<4x1xf32, #tpu.memory_space<vmem>>, %arg4: memref<1x256xf32, #tpu.memory_space<vmem>>, %arg5: memref<1x256xf32, #tpu.memory_space<vmem>>, %arg6: memref<256x256xf32, #tpu.memory_space<vmem>>, %arg7: memref<1x4x256xf32, #tpu.memory_space<vmem>>) attributes {dimension_semantics = [#tpu.dimension_semantics<parallel>], iteration_bounds = array<i64: 2>, scalar_prefetch = 0 : i64, scratch_operands = 0 : i64, tpu.core_type = #tpu.core_type<tc>, window_params = [{transform_indices = @transform_0, window_bounds = array<i64: 1, 36, 256>}, {pipeline_mode = #tpu.pipeline_mode<synchronous>, transform_indices = @transform_1, window_bounds = array<i64: 4, 36>}, {pipeline_mode = #tpu.pipeline_mode<synchronous>, transform_indices = @transform_2, window_bounds = array<i64: 4, 1>}, {pipeline_mode = #tpu.pipeline_mode<synchronous>, transform_indices = @transform_3, window_bounds = array<i64: 1, 256>}, {pipeline_mode = #tpu.pipeline_mode<synchronous>, transform_indices = @transform_4, window_bounds = array<i64: 1, 256>}, {pipeline_mode = #tpu.pipeline_mode<synchronous>, transform_indices = @transform_5, window_bounds = array<i64: 256, 256>}, {transform_indices = @transform_6, window_bounds = array<i64: 1, 4, 256>}]} {
    %c0 = arith.constant 0 : index
    %c0_0 = arith.constant 0 : index
    %0 = vector.load %arg2[%c0, %c0_0] : memref<4x36xf32, #tpu.memory_space<vmem>>, vector<4x36xf32>
    %c0_1 = arith.constant 0 : index
    %c0_2 = arith.constant 0 : index
    %c0_3 = arith.constant 0 : index
    %1 = vector.load %arg1[%c0_1, %c0_2, %c0_3] : memref<1x36x256xf32, #tpu.memory_space<vmem>>, vector<1x36x256xf32>
    %2 = vector.shape_cast %1 : vector<1x36x256xf32> to vector<36x256xf32>
    %cst = arith.constant dense<0.000000e+00> : vector<4x256xf32>
    %3 = tpu.matmul %0, %2, %cst {dimension_numbers = #tpu.dot_dimension_numbers<[1], [0], [0], [1], [0, 0, 1, 1], [], []>} : vector<4x36xf32>, vector<36x256xf32>, vector<4x256xf32> -> vector<4x256xf32>
    %c0_4 = arith.constant 0 : index
    %c0_5 = arith.constant 0 : index
    %4 = vector.load %arg3[%c0_4, %c0_5] : memref<4x1xf32, #tpu.memory_space<vmem>>, vector<4x1xf32>
    %5 = vector.broadcast %4 : vector<4x1xf32> to vector<4x256xf32>
    %6 = arith.addf %3, %5 : vector<4x256xf32>
    %c0_6 = arith.constant 0 : index
    %c0_7 = arith.constant 0 : index
    %7 = vector.load %arg6[%c0_6, %c0_7] : memref<256x256xf32, #tpu.memory_space<vmem>>, vector<256x256xf32>
    %cst_8 = arith.constant dense<0.000000e+00> : vector<4x256xf32>
    %8 = tpu.matmul %6, %7, %cst_8 {dimension_numbers = #tpu.dot_dimension_numbers<[1], [0], [0], [1], [0, 0, 1, 1], [], []>} : vector<4x256xf32>, vector<256x256xf32>, vector<4x256xf32> -> vector<4x256xf32>
    %9 = arith.subf %6, %8 : vector<4x256xf32>
    %10 = arith.mulf %9, %9 : vector<4x256xf32>
    %c0_9 = arith.constant 0 : index
    %c0_10 = arith.constant 0 : index
    %11 = vector.load %arg6[%c0_9, %c0_10] : memref<256x256xf32, #tpu.memory_space<vmem>>, vector<256x256xf32>
    %cst_11 = arith.constant dense<0.000000e+00> : vector<4x256xf32>
    %12 = tpu.matmul %10, %11, %cst_11 {dimension_numbers = #tpu.dot_dimension_numbers<[1], [0], [0], [1], [0, 0, 1, 1], [], []>} : vector<4x256xf32>, vector<256x256xf32>, vector<4x256xf32> -> vector<4x256xf32>
    %cst_12 = arith.constant 9.99999974E-6 : f32
    %13 = vector.broadcast %cst_12 : f32 to vector<4x256xf32>
    %14 = arith.addf %12, %13 : vector<4x256xf32>
    %15 = math.rsqrt %14 : vector<4x256xf32>
    %16 = arith.mulf %9, %15 : vector<4x256xf32>
    %c0_13 = arith.constant 0 : index
    %c0_14 = arith.constant 0 : index
    %17 = vector.load %arg4[%c0_13, %c0_14] : memref<1x256xf32, #tpu.memory_space<vmem>>, vector<1x256xf32>
    %18 = vector.broadcast %17 : vector<1x256xf32> to vector<4x256xf32>
    %19 = arith.mulf %16, %18 : vector<4x256xf32>
    %c0_15 = arith.constant 0 : index
    %c0_16 = arith.constant 0 : index
    %20 = vector.load %arg5[%c0_15, %c0_16] : memref<1x256xf32, #tpu.memory_space<vmem>>, vector<1x256xf32>
    %21 = vector.broadcast %20 : vector<1x256xf32> to vector<4x256xf32>
    %22 = arith.addf %19, %21 : vector<4x256xf32>
    %cst_17 = arith.constant 0.000000e+00 : f32
    %23 = vector.broadcast %cst_17 : f32 to vector<4x256xf32>
    %24 = arith.maximumf %22, %23 : vector<4x256xf32>
    %c0_18 = arith.constant 0 : index
    %c0_19 = arith.constant 0 : index
    %c0_20 = arith.constant 0 : index
    %25 = vector.load %arg7[%c0_18, %c0_19, %c0_20] : memref<1x4x256xf32, #tpu.memory_space<vmem>>, vector<1x4x256xf32>
    %26 = vector.shape_cast %25 : vector<1x4x256xf32> to vector<4x256xf32>
    %27 = vector.shape_cast %24 : vector<4x256xf32> to vector<1x4x256xf32>
    tpu.vector_store %arg7[%c0_18, %c0_19, %c0_20], %27 {strides = array<i32>} : memref<1x4x256xf32, #tpu.memory_space<vmem>>, vector<1x4x256xf32>,
    return
  }
  func.func @transform_0(%arg0: i32) -> (i32, i32, i32) {
    %c0_i32 = arith.constant 0 : i32
    %c0_i32_0 = arith.constant 0 : i32
    %c0_i32_1 = arith.constant 0 : i32
    return %arg0, %c0_i32, %c0_i32_0 : i32, i32, i32
  }
  func.func @transform_1(%arg0: i32) -> (i32, i32) {
    %c0_i32 = arith.constant 0 : i32
    %c0_i32_0 = arith.constant 0 : i32
    %c0_i32_1 = arith.constant 0 : i32
    return %c0_i32, %c0_i32_0 : i32, i32
  }
  func.func @transform_2(%arg0: i32) -> (i32, i32) {
    %c0_i32 = arith.constant 0 : i32
    %c0_i32_0 = arith.constant 0 : i32
    %c0_i32_1 = arith.constant 0 : i32
    return %c0_i32, %c0_i32_0 : i32, i32
  }
  func.func @transform_3(%arg0: i32) -> (i32, i32) {
    %c0_i32 = arith.constant 0 : i32
    %c0_i32_0 = arith.constant 0 : i32
    %c0_i32_1 = arith.constant 0 : i32
    return %c0_i32, %c0_i32_0 : i32, i32
  }
  func.func @transform_4(%arg0: i32) -> (i32, i32) {
    %c0_i32 = arith.constant 0 : i32
    %c0_i32_0 = arith.constant 0 : i32
    %c0_i32_1 = arith.constant 0 : i32
    return %c0_i32, %c0_i32_0 : i32, i32
  }
  func.func @transform_5(%arg0: i32) -> (i32, i32) {
    %c0_i32 = arith.constant 0 : i32
    %c0_i32_0 = arith.constant 0 : i32
    %c0_i32_1 = arith.constant 0 : i32
    return %c0_i32, %c0_i32_0 : i32, i32
  }
  func.func @transform_6(%arg0: i32) -> (i32, i32, i32) {
    %c0_i32 = arith.constant 0 : i32
    %c0_i32_0 = arith.constant 0 : i32
    %c0_i32_1 = arith.constant 0 : i32
    return %arg0, %c0_i32, %c0_i32_0 : i32, i32, i32
  }
}

</mosaic_0001>

<bundles_post_ra>
// kernel: tpu_custom_call.1
= control target key start
LH: loop header
LB: loop body
LE: loop exit
PB: predicated region body
PF: predicated region fallthrough
CT: control target
= control target key end

     0   :  { %11 = vsyncpa [#allocation3], 0  ;;  %s1210_s0 = inlined_call_operand.vmem [shape: f32[2,36,256], index: 0, kind: input, shape index: {}]   ;;  %s1211_s1 = inlined_call_operand.vmem [shape: f32[4,36], index: 1, kind: input, shape index: {}]   ;;  %s1212_s2 = inlined_call_operand.vmem [shape: f32[4,1], index: 2, kind: input, shape index: {}]   ;;  %s1213_s3 = inlined_call_operand.vmem [shape: f32[1,256], index: 3, kind: input, shape index: {}]   ;;  %s1214_s4 = inlined_call_operand.vmem [shape: f32[1,256], index: 4, kind: input, shape index: {}]   ;;  %s1215_s5 = inlined_call_operand.hbm [shape: f32[256,256], index: 5, kind: input, shape index: {}]   ;;  %s1216_s6 = inlined_call_operand.hbm [shape: f32[2,4,256], index: 6, kind: output, shape index: {}]  }
   0x1   :  { %12 = vsyncpa [#allocation4], 0 }
   0x2   :  { %14 = vsyncpa [#allocation4 + $0x1], 0  ;;  %s1049_s21 = smov 0   ;;  %s1051_s22 = smov 0  }
   0x3   :  { %s1053_s23 = smov 0   ;;  %s1055_s24 = smov 0  }
   0x4 LB: > { %s1070_s25 = sadd.s32 4294967295, %s1006_s24   ;;  %s699_s26 = sadd.s32 4294967294, %s1006_s24   ;;  %s1006_s24 = sphi %s1055_s24, %s1232_s24   ;;  %s1002_s23 = sphi %s1053_s23, %s1231_s23   ;;  %s998_s22 = sphi %s1051_s22, %s1230_s22   ;;  %s994_s21 = sphi %s1049_s21, %s1229_s21  }
   0x5   : > { %s1074_s27 = sadd.s32 1, %s1006_s24   ;;  %s158_s28 = sadd.s32 1, %s1002_s23 }
   0x6   : > { %s155_s29 = ssub.s32 %s1006_s24, %s1074_s27  ;;  %p168_p0 = scmp.ne.s32.totalorder %s1002_s23, %s998_s22 }
   0x7   : > { %p156_p1 = scmp.eq.s32.totalorder %s155_s29, 0  ;;  %p169_p2 = scmp.eq.s32.totalorder %s1070_s25, 1 }
   0x8   : > { %p174_p3 = scmp.ne.s32.totalorder %s998_s22, %s994_s21  ;;  %p175_p4 = scmp.eq.s32.totalorder %s699_s26, 1 }
   0x9   : > { %s1085_s30 = scalar_select %p156_p1, %s1002_s23, %s158_s28  }
   0xa   : > { %p1087_p5 = por %p169_p2, %p168_p0  ;;  %p1091_p6 = por %p175_p4, %p174_p3 }
   0xb   : > { %p700_p7 = scmp.ge.s32.totalorder %s1006_s24, 1  ;;  %p182_p8 = scmp.lt.s32.totalorder %s1006_s24, 3 }
   0xc   : > { %s1220_s7 = scalar_select %p1087_p5, 1, 0 }
   0xd   : > { %s1221_s8 = scalar_select %p1091_p6, 1, 0 }
   0xe   : > { %p1217_p9 = scmp.eq.s32.totalorder %s1070_s25, 0  ;;  %p1098_p10 = pnand %p700_p7, %p182_p8 }
   0xf   : > { %s1008_s10 = smov [#allocation2]   ;;  %s912_s15 = scalar_lea.hbm %s1215_s5, 8192 }
  0x10   : > { %s1222_s9 = scalar_select %p1098_p10, 1, 0 }
  0x11   : > { %s206_s11 = sshll.u32 %s1008_s10, 4  ;;  %p859_p11 = pneg %p1098_p10  ;;  %s207_s11 = int_to_ptr.vmem [resolvable:$true] %s206_s11 }
  0x12   : > { %p913_p13 = scmp.ne.s32.totalorder %s1215_s5, %s912_s15  ;;  %p919_p3 = scmp.lt.u32.totalorder %s912_s15, %s1215_s5 }
  0x13   : > { %p1106_p12 = pnand %p1217_p9, %p859_p11 }
  0x15   : > { %p914_p0 = pneg %p1106_p12 }
  0x17   : > { %p915_p1 = pnand %p914_p0, %p913_p13 }
  0x19   : > { %p916_p2 = pneg %p915_p1 }
  0x1b   : > { %p921_p4 = pnand %p919_p3, %p916_p2 }
  0x1d   : > { %924 = shalt.err (!%p921_p4)
}
  0x1e   : > { %s925_s20 = scalar_lea.vmem %s207_s11, 8192  ;;  %p933_p9 = scmp.lt.s32.totalorder %s207_s11, %s207_s11 }
  0x1f   : > { %p926_p7 = scmp.ne.s32.totalorder %s207_s11, %s925_s20  ;;  %p934_p6 = scmp.lt.s32.totalorder %s925_s20, %s925_s20 }
  0x21   : > { %p928_p8 = pnand %p926_p7, %p914_p0  ;;  %p935_p5 = por %p934_p6, %p933_p9 }
  0x23   : > { %p929_p11 = pneg %p928_p8 }
  0x25   : > { %p936_p10 = pnand %p935_p5, %p929_p11 }
  0x27   : > { %939 = shalt.err (!%p936_p10)
}
  0x28   : > { %s1009_s26 = smov 256   ;;  %s1010_s28 = smov 16  }
  0x29   : > { %862 = dma.hbm_to_vmem [thread:$0]  (!%p1106_p12), %s1215_s5, 8192, %s207_s11, [#allocation3], %s1009_s26, %s1009_s26, %s1010_s28  }
  0x2a   : > { %p1224_p13 = scmp.ne.s32.totalorder %s1222_s9, 0 }
  0x2b   : > { %p1225_p1 = scmp.eq.s32.totalorder (!%p1224_p13), %s1070_s25, 0 }
  0x2c   : > { %230 = sbr.rel (%p1224_p13) target bundleno = 756 (0x2f4), region = 44 }
  0x33   : > { %985 = dma.done.wait (%p1225_p1), [#allocation3], 8192   ;;  %p1226_p0 = pmov %p1225_p1 }
  0x34   : > { %p260_p5 = scmp.lt.s32.totalorder %s1070_s25, 1  ;;  %v1011_v0 = vmov 0.0   ;;  %v1012_v1 = vmov 0   ;;  %v276_v13 = vld [vmem:[%s1212_s2] sm:$0xf]  ;;  %v365_v16 = vld [vmem:[#allocation2 + $0x8] sm:$0xff] }
  0x35   : > { %987 = vsyncadd (%p1226_p0), [#allocation3], 4294959104  ;;  %357 = vmatprep.mubr.f32.mxu0 %v1011_v0  ;;  %907 = vset.pattern.permute.xlu0 %v1012_v1  ;;  %v367_v17 = vld [vmem:[#allocation2 + $0x18] sm:$0xff]  ;;  %v364_v18 = vld [vmem:[#allocation2] sm:$0xff]  ;;  %vm286_vm0 = vcmask 1043456   ;;  %vm282_vm1 = vcmask 293888  }
  0x36   : > { %s261_s13 = scalar_select %p260_p5, %s1070_s25, 1  ;;  %279 = vperm.xlu0 %907, %v276_v13   ;;  %v724_v19 = vpack.c.bf16 %v367_v17, %v365_v16  ;;  %v366_v20 = vld [vmem:[#allocation2 + $0x10] sm:$0xff]  ;;  %v369_v21 = vld [vmem:[#allocation2 + $0x28] sm:$0xff]  ;;  %v371_v22 = vld [vmem:[#allocation2 + $0x38] sm:$0xff] }
  0x37   : > { %v726_v23 = vpack.c.bf16 %v366_v20, %v364_v18  ;;  %v728_v24 = vpack.c.bf16 %v371_v22, %v369_v21  ;;  %v368_v25 = vld [vmem:[#allocation2 + $0x20] sm:$0xff]  ;;  %v370_v26 = vld [vmem:[#allocation2 + $0x30] sm:$0xff]  ;;  %v373_v27 = vld [vmem:[#allocation2 + $0x48] sm:$0xff]  ;;  %s257_s26 = sand.u32 1, %s998_s22   ;;  %p1227_p9 = scmp.ne.s32.totalorder %s1220_s7, 0 }
  0x38   : > { %s852_s12 = smul.u32 80, %s261_s13  ;;  %725 = vmatprep.subr.bf16.mxu1 %v724_v19  ;;  %v375_v28 = vld [vmem:[#allocation2 + $0x58] sm:$0xff]  ;;  %v730_v29 = vpack.c.bf16 %v370_v26, %v368_v25  ;;  %v372_v32 = vld [vmem:[#allocation2 + $0x40] sm:$0xff]  ;;  %v374_v33 = vld [vmem:[#allocation2 + $0x50] sm:$0xff]  ;;  %s705_s10 = sshll.u32 %s257_s26, 3 }
  0x39   : > { %727 = vmatpush1.bf16.msra.mxu1 %v726_v23  ;;  %v732_v31 = vpack.c.bf16 %v375_v28, %v373_v27  ;;  %v265_v34 = vld [vmem:[%s1211_s1] sm:$0xf]  ;;  %v377_v35 = vld [vmem:[#allocation2 + $0x68] sm:$0xff]  ;;  %v379_v36 = vld [vmem:[#allocation2 + $0x78] sm:$0xff]  ;;  %v734_v37 = vpack.c.bf16 %v374_v33, %v372_v32  ;;  %s715_s13 = sshll.u32 %s1070_s25, 7  ;;  %s614_s16 = scalar_lea.sflag [#allocation4], %s257_s26 }
  0x3a   : > { %s1137_s9 = scalar_lea.vmem %s1210_s0, %s852_s12  ;;  %729 = vmatprep.subr.bf16.mxu1 %v728_v24  ;;  %v736_v38 = vpack.c.bf16 %v379_v36, %v377_v35  ;;  %v376_v39 = vld [vmem:[#allocation2 + $0x60] sm:$0xff]  ;;  %v378_v40 = vld [vmem:[#allocation2 + $0x70] sm:$0xff]  ;;  %v381_v41 = vld [vmem:[#allocation2 + $0x88] sm:$0xff]  ;;  %s259_s12 = scalar_lea.vmem [#allocation5], %s705_s10 }
  0x3b   : > { %v267_v2 = vld [vmem:[%s1137_s9 + $0x8] sm:$0xff]  ;;  %v269_v3 = vld [vmem:[%s1137_s9 + $0x18] sm:$0xff]  ;;  %v266_v4 = vld [vmem:[%s1137_s9] sm:$0xff]  ;;  %v738_v43 = vpack.c.bf16 %v378_v40, %v376_v39  ;;  %s628_s14 = sshll.u32 %s259_s12, 4  ;;  %s1168_s15 = scalar_lea.hbm %s1216_s6, %s715_s13  ;;  %s1170_s14 = int_to_ptr.vmem [resolvable:$true] %s628_s14 }
  0x3c   : > { %v716_v5 = vpack.c.bf16 %v269_v3, %v267_v2  ;;  %v268_v6 = vld [vmem:[%s1137_s9 + $0x10] sm:$0xff]  ;;  %v271_v7 = vld [vmem:[%s1137_s9 + $0x28] sm:$0xff]  ;;  %v273_v8 = vld [vmem:[%s1137_s9 + $0x38] sm:$0xff]  ;;  %s940_s17 = scalar_lea.vmem %s1170_s14, 128  ;;  %s1013_s25 = smov [#allocation5]  }
  0x3d   : > { %v718_v9 = vpack.c.bf16 %v268_v6, %v266_v4  ;;  %v720_v10 = vpack.c.bf16 %v273_v8, %v271_v7  ;;  %v270_v11 = vld [vmem:[%s1137_s9 + $0x20] sm:$0xff]  ;;  %v272_v12 = vld [vmem:[%s1137_s9 + $0x30] sm:$0xff]  ;;  %v275_v15 = vld [vmem:[%s1137_s9 + $0x48] sm:$0xf]  ;;  %731 = vmatpush1.bf16.msra.mxu1 %v730_v29  ;;  %p941_p6 = scmp.ne.s32.totalorder %s1170_s14, %s940_s17  ;;  %s944_s18 = sshll.u32 %s1013_s25, 4  ;;  %s945_s18 = int_to_ptr.vmem [resolvable:$false] %s944_s18 }
  0x3e   : > { %717 = vmatprep.subr.bf16.mxu0 %v716_v5  ;;  %v722_v14 = vpack.c.bf16 %v272_v12, %v270_v11  ;;  %v274_v30 = vld [vmem:[%s1137_s9 + $0x40] sm:$0xf]  ;;  %733 = vmatprep.subr.bf16.mxu1 %v732_v31  ;;  %v383_v42 = vld [vmem:[#allocation2 + $0x98] sm:$0xff]  ;;  %v382_v46 = vld [vmem:[#allocation2 + $0x90] sm:$0xff]  ;;  %s946_s19 = scalar_lea.vmem %s945_s18, 256  ;;  %p947_p2 = scmp.lt.s32.totalorder %s1170_s14, %s945_s18 }
  0x3f   : > { %719 = vmatpush1.bf16.msra.mxu0 %v718_v9  ;;  %v740_v44 = vpack.c.bf16 %v383_v42, %v381_v41  ;;  %v380_v45 = vld [vmem:[#allocation2 + $0x80] sm:$0xff]  ;;  %v385_v47 = vld [vmem:[#allocation2 + $0xa8] sm:$0xff]  ;;  %v387_v48 = vld [vmem:[#allocation2 + $0xb8] sm:$0xff]  ;;  %p942_p10 = pnand %p941_p6, %p1227_p9  ;;  %p948_p3 = scmp.lt.s32.totalorder %s946_s19, %s940_s17 }
  0x40   : > { %721 = vmatprep.subr.bf16.mxu0 %v720_v10  ;;  %v742_v49 = vpack.c.bf16 %v382_v46, %v380_v45  ;;  %v744_v50 = vpack.c.bf16 %v387_v48, %v385_v47  ;;  %v384_v51 = vld [vmem:[#allocation2 + $0xa0] sm:$0xff]  ;;  %v386_v52 = vld [vmem:[#allocation2 + $0xb0] sm:$0xff]  ;;  %v389_v53 = vld [vmem:[#allocation2 + $0xc8] sm:$0xff] }
  0x41   : > { %735 = vmatpush1.bf16.msra.mxu1 %v734_v37  ;;  %v391_v54 = vld [vmem:[#allocation2 + $0xd8] sm:$0xff]  ;;  %v746_v55 = vpack.c.bf16 %v386_v52, %v384_v51  ;;  %v388_v57 = vld [vmem:[#allocation2 + $0xc0] sm:$0xff]  ;;  %v390_v58 = vld [vmem:[#allocation2 + $0xd0] sm:$0xff]  ;;  %p943_p12 = pneg %p942_p10  ;;  %p949_p4 = por %p948_p3, %p947_p2 }
  0x42   : > { %737 = vmatprep.subr.bf16.mxu1 %v736_v38  ;;  %v748_v56 = vpack.c.bf16 %v391_v54, %v389_v53  ;;  %v393_v59 = vld [vmem:[#allocation2 + $0xe8] sm:$0xff]  ;;  %v395_v60 = vld [vmem:[#allocation2 + $0xf8] sm:$0xff]  ;;  %v750_v61 = vpack.c.bf16 %v390_v58, %v388_v57  ;;  %v392_v63 = vld [vmem:[#allocation2 + $0xe0] sm:$0xff] }
  0x43   : > { %723 = vmatpush1.bf16.msra.mxu0 %v722_v14  ;;  %v752_v62 = vpack.c.bf16 %v395_v60, %v393_v59  ;;  %v394_v0 = vld [vmem:[#allocation2 + $0xf0] sm:$0xff]  ;;  %v397_v1 = vld [vmem:[#allocation2 + $0x108] sm:$0xff]  ;;  %v399_v2 = vld [vmem:[#allocation2 + $0x118] sm:$0xff]  ;;  %p950_p7 = pnand %p949_p4, %p943_p12 }
  0x44   : > { %707 = vmatprep.subr.msk.mxu0 %vm286_vm0, %v275_v15  ;;  %v754_v3 = vpack.c.bf16 %v394_v0, %v392_v63  ;;  %v756_v4 = vpack.c.bf16 %v399_v2, %v397_v1  ;;  %v396_v5 = vld [vmem:[#allocation2 + $0x100] sm:$0xff]  ;;  %v398_v6 = vld [vmem:[#allocation2 + $0x110] sm:$0xff]  ;;  %v401_v7 = vld [vmem:[#allocation2 + $0x128] sm:$0xff] }
  0x45   : > { %739 = vmatpush1.bf16.msra.mxu1 %v738_v43  ;;  %v403_v8 = vld [vmem:[#allocation2 + $0x138] sm:$0xff]  ;;  %v758_v9 = vpack.c.bf16 %v398_v6, %v396_v5  ;;  %v400_v11 = vld [vmem:[#allocation2 + $0x120] sm:$0xff]  ;;  %v402_v12 = vld [vmem:[#allocation2 + $0x130] sm:$0xff] }
  0x46   : > { %741 = vmatprep.subr.bf16.mxu1 %v740_v44  ;;  %v760_v10 = vpack.c.bf16 %v403_v8, %v401_v7  ;;  %v405_v13 = vld [vmem:[#allocation2 + $0x148] sm:$0xff]  ;;  %v407_v14 = vld [vmem:[#allocation2 + $0x158] sm:$0xff]  ;;  %v762_v15 = vpack.c.bf16 %v402_v12, %v400_v11  ;;  %v404_v17 = vld [vmem:[#allocation2 + $0x140] sm:$0xff] }
  0x47   : > { %708 = vmatpush1.msk.msra.mxu0 %vm286_vm0, %v274_v30  ;;  %v764_v16 = vpack.c.bf16 %v407_v14, %v405_v13  ;;  %v406_v18 = vld [vmem:[#allocation2 + $0x150] sm:$0xff]  ;;  %v411_v20 = vld [vmem:[#allocation2 + $0x178] sm:$0xff]  ;;  %v413_v25 = vld [vmem:[#allocation2 + $0x188] sm:$0xff] }
  0x48   : > { %709 = vmatmul.mubr.msk.f32.vlgmr.msra.gmra.mrb[0].mxu0 %vm282_vm1, %v265_v34  ;;  %789 = vmatprep.subr.bf16.mxu0 %v724_v19  ;;  %v409_v19 = vld [vmem:[#allocation2 + $0x168] sm:$0xff]  ;;  %v766_v21 = vpack.c.bf16 %v406_v18, %v404_v17  ;;  %v415_v26 = vld [vmem:[#allocation2 + $0x198] sm:$0xff]  ;;  %v414_v30 = vld [vmem:[#allocation2 + $0x190] sm:$0xff] }
  0x49   : > { %791 = vmatpush1.bf16.msra.mxu0 %v726_v23  ;;  %743 = vmatpush1.bf16.msra.mxu1 %v742_v49  ;;  %v768_v22 = vpack.c.bf16 %v411_v20, %v409_v19  ;;  %v408_v23 = vld [vmem:[#allocation2 + $0x160] sm:$0xff]  ;;  %v772_v28 = vpack.c.bf16 %v415_v26, %v413_v25  ;;  %v419_v32 = vld [vmem:[#allocation2 + $0x1b8] sm:$0xff]  ;;  %v418_v36 = vld [vmem:[#allocation2 + $0x1b0] sm:$0xff] }
  0x4a   : > { %793 = vmatprep.subr.bf16.mxu0 %v728_v24  ;;  %745 = vmatprep.subr.bf16.mxu1 %v744_v50  ;;  %v410_v24 = vld [vmem:[#allocation2 + $0x170] sm:$0xff]  ;;  %v416_v35 = vld [vmem:[#allocation2 + $0x1a0] sm:$0xff]  ;;  %v427_v45 = vld [vmem:[#allocation2 + $0x1f8] sm:$0xff] }
  0x4b   : > { %v770_v27 = vpack.c.bf16 %v410_v24, %v408_v23  ;;  %v778_v39 = vpack.c.bf16 %v418_v36, %v416_v35  ;;  %v420_v41 = vld [vmem:[#allocation2 + $0x1c0] sm:$0xff]  ;;  %v422_v42 = vld [vmem:[#allocation2 + $0x1d0] sm:$0xff] }
  0x4c   : > { %v424_v47 = vld [vmem:[#allocation2 + $0x1e0] sm:$0xff]  ;;  %v426_v48 = vld [vmem:[#allocation2 + $0x1f0] sm:$0xff] }
  0x4d   : > { %795 = vmatpush1.bf16.msra.mxu0 %v730_v29  ;;  %747 = vmatpush1.bf16.msra.mxu1 %v746_v55  ;;  %v412_v29 = vld [vmem:[#allocation2 + $0x180] sm:$0xff] }
  0x4e   : > { %797 = vmatprep.subr.bf16.mxu0 %v732_v31  ;;  %749 = vmatprep.subr.bf16.mxu1 %v748_v56  ;;  %v417_v31 = vld [vmem:[#allocation2 + $0x1a8] sm:$0xff]  ;;  %v774_v33 = vpack.c.bf16 %v414_v30, %v412_v29  ;;  %v592_v6 = vld [vmem:[%s1214_s4] sm:$0x3] }
  0x4f   : > { %v776_v34 = vpack.c.bf16 %v419_v32, %v417_v31 }
  0x51   : > { %799 = vmatpush1.bf16.msra.mxu0 %v734_v37  ;;  %751 = vmatpush1.bf16.msra.mxu1 %v750_v61  ;;  %v421_v37 = vld [vmem:[#allocation2 + $0x1c8] sm:$0xff] }
  0x52   : > { %801 = vmatprep.subr.bf16.mxu0 %v736_v38  ;;  %753 = vmatprep.subr.bf16.mxu1 %v752_v62  ;;  %v423_v38 = vld [vmem:[#allocation2 + $0x1d8] sm:$0xff] }
  0x53   : > { %v780_v40 = vpack.c.bf16 %v423_v38, %v421_v37 }
  0x55   : > { %803 = vmatpush1.bf16.msra.mxu0 %v738_v43  ;;  %755 = vmatpush1.bf16.msra.mxu1 %v754_v3  ;;  %v782_v43 = vpack.c.bf16 %v422_v42, %v420_v41 }
  0x56   : > { %805 = vmatprep.subr.bf16.mxu0 %v740_v44  ;;  %757 = vmatprep.subr.bf16.mxu1 %v756_v4  ;;  %v425_v44 = vld [vmem:[#allocation2 + $0x1e8] sm:$0xff] }
  0x57   : > { %v784_v46 = vpack.c.bf16 %v427_v45, %v425_v44 }
  0x59   : > { %807 = vmatpush1.bf16.msra.mxu0 %v742_v49  ;;  %759 = vmatpush1.bf16.msra.mxu1 %v758_v9  ;;  %v786_v49 = vpack.c.bf16 %v426_v48, %v424_v47 }
  0x5a   : > { %809 = vmatprep.subr.bf16.mxu0 %v744_v50  ;;  %761 = vmatprep.subr.bf16.mxu1 %v760_v10 }
  0x5d   : > { %811 = vmatpush1.bf16.msra.mxu0 %v746_v55  ;;  %763 = vmatpush1.bf16.msra.mxu1 %v762_v15 }
  0x5e   : > { %813 = vmatprep.subr.bf16.mxu0 %v748_v56  ;;  %765 = vmatprep.subr.bf16.mxu1 %v764_v16 }
  0x61   : > { %815 = vmatpush1.bf16.msra.mxu0 %v750_v61  ;;  %767 = vmatpush1.bf16.msra.mxu1 %v766_v21 }
  0x62   : > { %817 = vmatprep.subr.bf16.mxu0 %v752_v62  ;;  %769 = vmatprep.subr.bf16.mxu1 %v768_v22  ;;  %v580_v62 = vlaneseq }
  0x64   : > { %v581_v2 = vshrl.u32 %v580_v62, 7 }
  0x65   : > { %819 = vmatpush1.bf16.msra.mxu0 %v754_v3  ;;  %771 = vmatpush1.bf16.msra.mxu1 %v770_v27 }
  0x66   : > { %821 = vmatprep.subr.bf16.mxu0 %v756_v4  ;;  %773 = vmatprep.subr.bf16.mxu1 %v772_v28  ;;  %v582_v3 = vsub.s32 0, %v581_v2  ;;  %v578_v4 = vld [vmem:[%s1213_s3] sm:$0x3]  ;;  %v586_v5 = vsub.s32 1, %v581_v2 }
  0x68   : > { %v583_v7 = vrot.slane %v578_v4, %v582_v3  ;;  %v597_v12 = vrot.slane %v592_v6, %v582_v3  ;;  %v601_v14 = vrot.slane %v592_v6, %v586_v5 }
  0x69   : > { %823 = vmatpush1.bf16.msra.mxu0 %v758_v9  ;;  %775 = vmatpush1.bf16.msra.mxu1 %v774_v33  ;;  %v587_v9 = vrot.slane %v578_v4, %v586_v5 }
  0x6a   : > { %825 = vmatprep.subr.bf16.mxu0 %v760_v10  ;;  %777 = vmatprep.subr.bf16.mxu1 %v776_v34 }
  0x6d   : > { %827 = vmatpush1.bf16.msra.mxu0 %v762_v15  ;;  %779 = vmatpush1.bf16.msra.mxu1 %v778_v39 }
  0x6e   : > { %829 = vmatprep.subr.bf16.mxu0 %v764_v16  ;;  %781 = vmatprep.subr.bf16.mxu1 %v780_v40 }
  0x71   : > { %831 = vmatpush1.bf16.msra.mxu0 %v766_v21  ;;  %783 = vmatpush1.bf16.msra.mxu1 %v782_v43 }
  0x72   : > { %833 = vmatprep.subr.bf16.mxu0 %v768_v22  ;;  %785 = vmatprep.subr.bf16.mxu1 %v784_v46 }
  0x75   : > { %835 = vmatpush1.bf16.msra.mxu0 %v770_v27  ;;  %787 = vmatpush1.bf16.msra.mxu1 %v786_v49 }
  0x76   : > { %837 = vmatprep.subr.bf16.mxu0 %v772_v28 }
  0x79   : > { %839 = vmatpush1.bf16.msra.mxu0 %v774_v33 }
  0x7a   : > { %841 = vmatprep.subr.bf16.mxu0 %v776_v34 }
  0x7d   : > { %843 = vmatpush1.bf16.msra.mxu0 %v778_v39 }
  0x7e   : > { %845 = vmatprep.subr.bf16.mxu0 %v780_v40 }
  0x81   : > { %847 = vmatpush1.bf16.msra.mxu0 %v782_v43 }
  0x82   : > { %849 = vmatprep.subr.bf16.mxu0 %v784_v46 }
  0x85   : > { %851 = vmatpush1.bf16.msra.mxu0 %v786_v49 }
  0xb5   : > { %v280_v50 = vpop.permute.xlu0 %279 }
 0x11b   : > { %v359_v51 = vpop.f32.mrb[0].mxu0 }
 0x11c   : > { %v361_v52 = vpop.f32.mrb[1].mxu0  ;;  %v360_v54 = vadd.f32 %v359_v51, %v280_v50 }
 0x11d   : > { %v362_v53 = vadd.f32 %v361_v52, %v280_v50 }
 0x11f   : > { %492 = vmatprep.mubr.f32.mxu1 %v362_v53 }
 0x120   : > { %493 = vmatmul.mubr.f32.vlgmr.msra.gmra.mrb[0].mxu1 %v360_v54 }
 0x1f3   : > { %v494_v55 = vpop.f32.mrb[0].mxu1 }
 0x1f4   : > { %v499_v56 = vsub.f32 %v360_v54, %v494_v55  ;;  %v496_v57 = vpop.f32.mrb[1].mxu1 }
 0x1f5   : > { %v500_v58 = vsub.f32 %v362_v53, %v496_v57 }
 0x1f6   : > { %v501_v60 = vmul.f32 %v499_v56, %v499_v56 }
 0x1f7   : > { %v502_v59 = vmul.f32 %v500_v58, %v500_v58 }
 0x1f9   : > { %567 = vmatprep.mubr.f32.mxu0 %v502_v59 }
 0x1fa   : > { %568 = vmatmul.mubr.f32.vlgmr.msra.gmra.mrb[2].mxu0 %v501_v60 }
 0x2cd   : > { %v569_v61 = vpop.f32.mrb[2].mxu0 }
 0x2ce   : > { %v570_v63 = vadd.f32 1e-05, %v569_v61  ;;  %v571_v0 = vpop.f32.mrb[3].mxu0 }
 0x2cf   : > { %v572_v1 = vadd.f32 1e-05, %v571_v0 }
 0x2d0   : > { %908 = vrsqrt.f32 %v570_v63 }
 0x2d1   : > { %910 = vrsqrt.f32 %v572_v1 }
 0x2da   : > { %v909_v8 = vpop.eup %908 }
 0x2db   : > { %v911_v10 = vpop.eup %910  ;;  %v576_v11 = vmul.f32 %v909_v8, %v499_v56 }
 0x2dc   : > { %v577_v13 = vmul.f32 %v911_v10, %v500_v58 }
 0x2dd   : > { %v590_v15 = vmul.f32 %v583_v7, %v576_v11 }
 0x2de   : > { %v591_v16 = vmul.f32 %v587_v9, %v577_v13 }
 0x2df   : > { %v604_v17 = vadd.f32 %v597_v12, %v590_v15 }
 0x2e0   : > { %v605_v18 = vadd.f32 %v601_v14, %v591_v16 }
 0x2e1   : > { %v606_v19 = vmax.f32 %v604_v17, 0.0 }
 0x2e2   : > { %v607_v20 = vmax.f32 %v605_v18, 0.0 }
 0x2e4   : > { %v610_v21 = vcombine.low %v606_v19, %v607_v20 }
 0x2e6   : > { %612 = vst [vmem:[%s259_s12] sm:$0xff] %v610_v21 }
 0x2e7   : > { %953 = shalt.err (!%p950_p7)
}
 0x2e8   : > { %s954_s20 = scalar_lea.hbm %s1168_s15, 128  ;;  %s958_s29 = scalar_lea.hbm %s1216_s6, 256 }
 0x2e9   : > { %p955_p8 = scmp.ne.s32.totalorder %s1168_s15, %s954_s20  ;;  %p959_p1 = scmp.lt.u32.totalorder %s1168_s15, %s1216_s6 }
 0x2ea   : > { %p960_p0 = scmp.lt.u32.totalorder %s958_s29, %s954_s20  ;;  %p962_p6 = scmp.lt.u32.totalorder %s954_s20, %s1168_s15 }
 0x2eb   : > { %p956_p11 = pnand %p955_p8, %p1227_p9 }
 0x2ec   : > { %p961_p5 = por %p960_p0, %p959_p1 }
 0x2ed   : > { %p957_p13 = pneg %p956_p11 }
 0x2ee   : > { %p963_p10 = por %p962_p6, %p961_p5 }
 0x2f0   : > { %p964_p12 = pnand %p963_p10, %p957_p13 }
 0x2f2   : > { %967 = shalt.err (!%p964_p12)
}
 0x2f3   : > { %857 = dma.vmem_to_hbm [thread:$0]  (%p1227_p9), %s1170_s14, 128, %s1168_s15, %s614_s16  }
 0x2f4 PF: > { %p869_p2 = scmp.ge.s32.totalorder %s1006_s24, 2  ;;  %s640_s12 = sand.u32 1, %s994_s21  }
 0x2f5   : > { %p1228_p3 = scmp.ne.s32.totalorder %s1221_s8, 0  ;;  %s641_s11 = scalar_lea.sflag [#allocation4], %s640_s12 }
 0x2f7   : > { %p864_p4 = pnand %p869_p2, %p1228_p3 }
 0x2f9   : > { %989 = dma.done.wait (!%p864_p4), %s641_s11, 128  }
 0x2fa   : > { %991 = vsyncadd (!%p864_p4), %s641_s11, 4294967168  ;;  %p17_p7 = scmp.ge.s32.totalorder %s1074_s27, 4   ;;  %s1229_s21 = smov %s998_s22 }
 0x2fb   : > { %s1230_s22 = smov %s1002_s23  ;;  %s1231_s23 = smov %s1085_s30 }
 0x2fc   : > { %s1232_s24 = smov %s1074_s27  ;;  %19 = sbr.rel (!%p17_p7) target bundleno = 4 (0x4), region = 84 }
 0x303   :  { %646 = vsyncpa [#allocation3], 1 }
 0x304   :  { %648 = vsyncpa [#allocation3 + $0x1], 1 }
 0x305   :  { %649 = vsyncpa [#allocation4], 1 }
 0x306   :  { %651 = vsyncpa [#allocation4 + $0x1], 1 }

</bundles_post_ra>
